<compile_context>
chip_gen: v5e
topology: v5e:2x2
jax: 0.10.0
libtpu: 0.0.40
codegen_flags: <defaults>
</compile_context>

<pallas_src>
import math
import functools

import jax
import jax.numpy as jnp
from jax import lax
from jax.experimental import pallas as pl
from jax.experimental.pallas import tpu as pltpu


def _flash_cross_attn_kernel(q_ref, k_ref, v_ref, o_ref,
                             q_sc, m_sc, l_sc, acc_sc,
                             *, heads, attn_ch, scale, n_data, tk, mask_tail):
    """Blocks: q/o = (1, tq, width); k/v = (1, tk, width).
    Scratch : q_sc (heads, tq, attn_ch) input dtype (scaled, head-split q),
              m/l  (heads, tq, 1) f32, acc (heads, tq, attn_ch) f32.
    Grid    : (batch, n_ctx tiles, n_data tiles); last axis is the reduction.
    """
    j = pl.program_id(2)

    @pl.when(j == 0)
    def _init():
        # Stage the scaled, head-split q tile once per (b, i): later per-head
        # reads are lane-0 aligned and the scale multiply is not repeated
        # across the j (n_data) loop.
        for h in range(heads):
            lo = h * attn_ch
            q_sc[h] = q_ref[0, :, lo:lo + attn_ch] * scale
        m_sc[...] = jnp.full_like(m_sc, -jnp.inf)
        l_sc[...] = jnp.zeros_like(l_sc)
        acc_sc[...] = jnp.zeros_like(acc_sc)

    if mask_tail:
        # Padding only exists on the last j tile; the compare is one cheap
        # (1, tk) VPU op shared by all heads.
        col = j * tk + lax.broadcasted_iota(jnp.int32, (1, tk), 1)
        key_valid = col < n_data

    # heads is small in this module's configs -> static unroll; all per-head
    # scratch accesses start at lane 0.
    # TODO(synk): switch to lax.fori_loop over heads for very large head counts.
    for h in range(heads):
        lo = h * attn_ch
        q = q_sc[h]                                   # (tq, attn_ch), pre-scaled
        k = k_ref[0, :, lo:lo + attn_ch]              # (tk, attn_ch)
        v = v_ref[0, :, lo:lo + attn_ch]

        # scores (tq, tk): contract head_dim of q and k directly (no k^T copy)
        s = lax.dot_general(q, k, (((1,), (1,)), ((), ())),
                            preferred_element_type=jnp.float32)
        if mask_tail:
            s = jnp.where(key_valid, s, -1e30)

        m_prev = m_sc[h]                                            # (tq, 1)
        m_new = jnp.maximum(m_prev, jnp.max(s, axis=-1, keepdims=True))
        alpha = jnp.exp(m_prev - m_new)
        p = jnp.exp(s - m_new)                                      # f32
        l_sc[h] = alpha * l_sc[h] + jnp.sum(p, axis=-1, keepdims=True)
        pv = jnp.dot(p.astype(v.dtype), v,                          # MXU, f32 acc
                     preferred_element_type=jnp.float32)
        acc_sc[h] = alpha * acc_sc[h] + pv                          # lane-0 aligned
        m_sc[h] = m_new

    @pl.when(j == pl.num_programs(2) - 1)
    def _finalize():
        # Exact normalization (once per q tile), one full multiply over all
        # heads, a single head-interleave along lanes, one lane-dense store.
        normalized = acc_sc[...] / l_sc[...]                        # (heads, tq, attn_ch)
        out = jnp.concatenate([normalized[h] for h in range(heads)], axis=-1)
        o_ref[0] = out.astype(o_ref.dtype)


def _round_up(x, m):
    return ((x + m - 1) // m) * m


def _choose_tile(dim, target, align):
    """Tile that is a multiple of `align`, <= ~target, and keeps the padding of
    `dim` up to a tile multiple small (splits dim into roughly equal chunks
    instead of falling back to tiny divisors or the full dimension)."""
    tile = min(_round_up(dim, align), _round_up(target, align))
    n_chunks = -(-dim // tile)
    return _round_up(-(-dim // n_chunks), align)


def _vmem_cap_bytes():
    try:
        cap = getattr(pltpu.get_tpu_info(), "vmem_capacity_bytes", None)
        if cap:
            return int(cap)
    except Exception:
        pass
    return 64 << 20   # conservative (v7x-sized) fallback


def qkv_multihead_cross_attention(q, k, v, *, heads,
                                  tq_target=512, tk_target=1024):
    """q: (bs, n_ctx, width); k, v: (bs, n_data, width) -> (bs, n_ctx, width)."""
    bs, n_ctx, width = q.shape
    _, n_data, _ = k.shape
    assert k.shape == v.shape and k.shape[0] == bs and k.shape[2] == width
    assert width % heads == 0
    attn_ch = width // heads
    # torch scales both q and k by attn_ch**-0.25; fold into one q-side scale.
    scale = 1.0 / math.sqrt(attn_ch)

    itemsize = jnp.dtype(q.dtype).itemsize
    sub = {4: 8, 2: 16, 1: 32}.get(itemsize, 8)      # sublane packing per dtype

    tq = _choose_tile(n_ctx, tq_target, sub)
    tk = _choose_tile(n_data, tk_target, sub)
    grid_i = -(-n_ctx // tq)

    # v7x has 2 TensorCores: keep the "parallel" grid extent >= 2 when the
    # problem is large enough to be worth splitting (harmless on v5e/v6e).
    if bs * grid_i < 2 and n_ctx >= 256:
        tq_half = _round_up(-(-n_ctx // 2), sub)
        if -(-n_ctx // tq_half) >= 2:
            tq = tq_half
            grid_i = -(-n_ctx // tq)

    grid_j = -(-n_data // tk)
    n_ctx_p = grid_i * tq
    n_data_p = grid_j * tk

    if n_ctx_p != n_ctx:                             # padded query rows: sliced off below
        q = jnp.pad(q, ((0, 0), (0, n_ctx_p - n_ctx), (0, 0)))
    mask_tail = n_data_p != n_data
    if mask_tail:                                    # padded keys: masked in-kernel
        pad = n_data_p - n_data
        k = jnp.pad(k, ((0, 0), (0, pad), (0, 0)))
        v = jnp.pad(v, ((0, 0), (0, pad), (0, 0)))

    kernel = functools.partial(
        _flash_cross_attn_kernel, heads=heads, attn_ch=attn_ch, scale=scale,
        n_data=n_data, tk=tk, mask_tail=mask_tail)

    # Chip-aware VMEM budget: double-buffered q/k/v/o blocks + lane-padded f32 /
    # staged-q scratch + live (tq, tk) score temporaries, with headroom, capped
    # at 75% of this chip's physical VMEM (64 MiB on v7x, 128 MiB on v5e/v6e).
    lane_ch = max(attn_ch, 128)
    io_bytes = 2 * itemsize * (2 * tq * width + 2 * tk * width)
    scratch_bytes = (4 * heads * tq * (lane_ch + 2 * 128)
                     + itemsize * heads * tq * lane_ch)
    work_bytes = 4 * 4 * tq * tk
    vmem_limit = min(int(0.75 * _vmem_cap_bytes()),
                     max(32 << 20, int(1.5 * (io_bytes + scratch_bytes + work_bytes))))

    out = pl.pallas_call(
        kernel,
        out_shape=jax.ShapeDtypeStruct((bs, n_ctx_p, width), q.dtype),
        grid_spec=pltpu.PrefetchScalarGridSpec(
            num_scalar_prefetch=0,
            grid=(bs, grid_i, grid_j),
            in_specs=[
                pl.BlockSpec((1, tq, width), lambda b, i, j: (b, i, 0)),
                pl.BlockSpec((1, tk, width), lambda b, i, j: (b, j, 0)),
                pl.BlockSpec((1, tk, width), lambda b, i, j: (b, j, 0)),
            ],
            out_specs=pl.BlockSpec((1, tq, width), lambda b, i, j: (b, i, 0)),
            scratch_shapes=[
                pltpu.VMEM((heads, tq, attn_ch), q.dtype),      # staged q * scale
                pltpu.VMEM((heads, tq, 1), jnp.float32),        # running max m
                pltpu.VMEM((heads, tq, 1), jnp.float32),        # running denom l
                pltpu.VMEM((heads, tq, attn_ch), jnp.float32),  # output accumulator
            ],
        ),
        compiler_params=pltpu.CompilerParams(
            dimension_semantics=("parallel", "parallel", "arbitrary"),
            vmem_limit_bytes=vmem_limit),
    )(q, k, v)

    if n_ctx_p != n_ctx:
        out = out[:, :n_ctx, :]
    return out


def _reference(q, k, v, *, heads):
    bs, n_ctx, width = q.shape
    _, n_data, _ = k.shape
    attn_ch = width // heads
    scale = 1.0 / math.sqrt(math.sqrt(attn_ch))
    qh = q.reshape(bs, n_ctx, heads, attn_ch)
    kh = k.reshape(bs, n_data, heads, attn_ch)
    vh = v.reshape(bs, n_data, heads, attn_ch)
    w = jnp.einsum('bthc,bshc->bhts', qh * scale, kh * scale)
    w = jax.nn.softmax(w.astype(jnp.float32), axis=-1).astype(w.dtype)
    return jnp.einsum('bhts,bshc->bthc', w, vh).reshape(bs, n_ctx, width)


if __name__ == "__main__":
    key = jax.random.PRNGKey(0)

    # 1) Small shapes consistent with the module's forward (single-tile path).
    bs, n_ctx, n_data, heads, width = 2, 8, 16, 4, 32
    kq, kk, kv = jax.random.split(key, 3)
    q = jax.random.normal(kq, (bs, n_ctx, width), dtype=jnp.float32)
    k = jax.random.normal(kk, (bs, n_data, width), dtype=jnp.float32)
    v = jax.random.normal(kv, (bs, n_data, width), dtype=jnp.float32)

    out = jax.block_until_ready(qkv_multihead_cross_attention(q, k, v, heads=heads))
    ref = _reference(q, k, v, heads=heads)
    assert out.shape == (bs, n_ctx, width)
    assert jnp.allclose(out, ref, atol=1e-2, rtol=1e-2), "mismatch vs reference (small)"

    # 2) Moderate shape on the default tiling path (also exercises the v7x
    #    two-q-tile split since bs == 1).
    bs2, n_ctx2, n_data2, heads2, width2 = 1, 256, 1024, 4, 256
    kq2, kk2, kv2 = jax.random.split(jax.random.PRNGKey(1), 3)
    q2 = jax.random.normal(kq2, (bs2, n_ctx2, width2), dtype=jnp.float32)
    k2 = jax.random.normal(kk2, (bs2, n_data2, width2), dtype=jnp.float32)
    v2 = jax.random.normal(kv2, (bs2, n_data2, width2), dtype=jnp.float32)

    out2 = jax.block_until_ready(qkv_multihead_cross_attention(q2, k2, v2, heads=heads2))
    ref2 = _reference(q2, k2, v2, heads=heads2)
    assert out2.shape == (bs2, n_ctx2, width2)
    assert jnp.allclose(out2, ref2, atol=1e-2, rtol=1e-2), "mismatch vs reference (tiled)"

    # 3) Ragged shapes: multi-step online-softmax reduction + q/k padding and
    #    key tail masking, more heads.
    bs3, n_ctx3, n_data3, heads3, width3 = 1, 200, 1000, 8, 256
    kq3, kk3, kv3 = jax.random.split(jax.random.PRNGKey(2), 3)
    q3 = jax.random.normal(kq3, (bs3, n_ctx3, width3), dtype=jnp.float32)
    k3 = jax.random.normal(kk3, (bs3, n_data3, width3), dtype=jnp.float32)
    v3 = jax.random.normal(kv3, (bs3, n_data3, width3), dtype=jnp.float32)

    out3 = jax.block_until_ready(
        qkv_multihead_cross_attention(q3, k3, v3, heads=heads3,
                                      tq_target=128, tk_target=256))
    ref3 = _reference(q3, k3, v3, heads=heads3)
    assert out3.shape == (bs3, n_ctx3, width3)
    assert jnp.allclose(out3, ref3, atol=1e-2, rtol=1e-2), "mismatch vs reference (ragged)"

    print("KERNEL_OK")
</pallas_src>

<mosaic_0001>
module attributes {stable_mosaic.version = 11 : i64} {
  func.func @_flash_cross_attn_kernel(%arg0: i32, %arg1: i32, %arg2: i32, %arg3: memref<1x8x32xf32, #tpu.memory_space<vmem>>, %arg4: memref<1x16x32xf32, #tpu.memory_space<vmem>>, %arg5: memref<1x16x32xf32, #tpu.memory_space<vmem>>, %arg6: memref<1x8x32xf32, #tpu.memory_space<vmem>>, %arg7: memref<4x8x8xf32, #tpu.memory_space<vmem>>, %arg8: memref<4x8x1xf32, #tpu.memory_space<vmem>>, %arg9: memref<4x8x1xf32, #tpu.memory_space<vmem>>, %arg10: memref<4x8x8xf32, #tpu.memory_space<vmem>>) attributes {dimension_semantics = [#tpu.dimension_semantics<parallel>, #tpu.dimension_semantics<parallel>, #tpu.dimension_semantics<arbitrary>], iteration_bounds = array<i64: 2, 1, 1>, scalar_prefetch = 0 : i64, scratch_operands = 4 : i64, tpu.core_type = #tpu.core_type<tc>, window_params = [{transform_indices = @transform_0, window_bounds = array<i64: 1, 8, 32>}, {transform_indices = @transform_1, window_bounds = array<i64: 1, 16, 32>}, {transform_indices = @transform_2, window_bounds = array<i64: 1, 16, 32>}, {transform_indices = @transform_3, window_bounds = array<i64: 1, 8, 32>}]} {
    %c0_i32 = arith.constant 0 : i32
    %0 = arith.cmpi eq, %arg2, %c0_i32 : i32
    %1 = arith.extui %0 : i1 to i32
    %c0_i32_0 = arith.constant 0 : i32
    %2 = arith.cmpi ne, %1, %c0_i32_0 : i32
    scf.if %2 {
      %c0_119 = arith.constant 0 : index
      %c0_120 = arith.constant 0 : index
      %c0_121 = arith.constant 0 : index
      %158 = vector.load %arg3[%c0_119, %c0_120, %c0_121] : memref<1x8x32xf32, #tpu.memory_space<vmem>>, vector<1x8x8xf32>
      %159 = vector.shape_cast %158 : vector<1x8x8xf32> to vector<8x8xf32>
      %cst_122 = arith.constant 0.353553385 : f32
      %160 = vector.broadcast %cst_122 : f32 to vector<8x8xf32>
      %161 = arith.mulf %159, %160 : vector<8x8xf32>
      %c0_123 = arith.constant 0 : index
      %c0_124 = arith.constant 0 : index
      %c0_125 = arith.constant 0 : index
      %162 = vector.load %arg7[%c0_123, %c0_124, %c0_125] : memref<4x8x8xf32, #tpu.memory_space<vmem>>, vector<1x8x8xf32>
      %163 = vector.shape_cast %162 : vector<1x8x8xf32> to vector<8x8xf32>
      %164 = vector.shape_cast %161 : vector<8x8xf32> to vector<1x8x8xf32>
      tpu.vector_store %arg7[%c0_123, %c0_124, %c0_125], %164 {strides = array<i32>} : memref<4x8x8xf32, #tpu.memory_space<vmem>>, vector<1x8x8xf32>,
      %c0_126 = arith.constant 0 : index
      %c0_127 = arith.constant 0 : index
      %c8_128 = arith.constant 8 : index
      %165 = vector.load %arg3[%c0_126, %c0_127, %c8_128] : memref<1x8x32xf32, #tpu.memory_space<vmem>>, vector<1x8x8xf32>
      %166 = vector.shape_cast %165 : vector<1x8x8xf32> to vector<8x8xf32>
      %cst_129 = arith.constant 0.353553385 : f32
      %167 = vector.broadcast %cst_129 : f32 to vector<8x8xf32>
      %168 = arith.mulf %166, %167 : vector<8x8xf32>
      %c1_130 = arith.constant 1 : index
      %c0_131 = arith.constant 0 : index
      %c0_132 = arith.constant 0 : index
      %169 = vector.load %arg7[%c1_130, %c0_131, %c0_132] : memref<4x8x8xf32, #tpu.memory_space<vmem>>, vector<1x8x8xf32>
      %170 = vector.shape_cast %169 : vector<1x8x8xf32> to vector<8x8xf32>
      %171 = vector.shape_cast %168 : vector<8x8xf32> to vector<1x8x8xf32>
      tpu.vector_store %arg7[%c1_130, %c0_131, %c0_132], %171 {strides = array<i32>} : memref<4x8x8xf32, #tpu.memory_space<vmem>>, vector<1x8x8xf32>,
      %c0_133 = arith.constant 0 : index
      %c0_134 = arith.constant 0 : index
      %c16_135 = arith.constant 16 : index
      %172 = vector.load %arg3[%c0_133, %c0_134, %c16_135] : memref<1x8x32xf32, #tpu.memory_space<vmem>>, vector<1x8x8xf32>
      %173 = vector.shape_cast %172 : vector<1x8x8xf32> to vector<8x8xf32>
      %cst_136 = arith.constant 0.353553385 : f32
      %174 = vector.broadcast %cst_136 : f32 to vector<8x8xf32>
      %175 = arith.mulf %173, %174 : vector<8x8xf32>
      %c2_137 = arith.constant 2 : index
      %c0_138 = arith.constant 0 : index
      %c0_139 = arith.constant 0 : index
      %176 = vector.load %arg7[%c2_137, %c0_138, %c0_139] : memref<4x8x8xf32, #tpu.memory_space<vmem>>, vector<1x8x8xf32>
      %177 = vector.shape_cast %176 : vector<1x8x8xf32> to vector<8x8xf32>
      %178 = vector.shape_cast %175 : vector<8x8xf32> to vector<1x8x8xf32>
      tpu.vector_store %arg7[%c2_137, %c0_138, %c0_139], %178 {strides = array<i32>} : memref<4x8x8xf32, #tpu.memory_space<vmem>>, vector<1x8x8xf32>,
      %c0_140 = arith.constant 0 : index
      %c0_141 = arith.constant 0 : index
      %c24_142 = arith.constant 24 : index
      %179 = vector.load %arg3[%c0_140, %c0_141, %c24_142] : memref<1x8x32xf32, #tpu.memory_space<vmem>>, vector<1x8x8xf32>
      %180 = vector.shape_cast %179 : vector<1x8x8xf32> to vector<8x8xf32>
      %cst_143 = arith.constant 0.353553385 : f32
      %181 = vector.broadcast %cst_143 : f32 to vector<8x8xf32>
      %182 = arith.mulf %180, %181 : vector<8x8xf32>
      %c3_144 = arith.constant 3 : index
      %c0_145 = arith.constant 0 : index
      %c0_146 = arith.constant 0 : index
      %183 = vector.load %arg7[%c3_144, %c0_145, %c0_146] : memref<4x8x8xf32, #tpu.memory_space<vmem>>, vector<1x8x8xf32>
      %184 = vector.shape_cast %183 : vector<1x8x8xf32> to vector<8x8xf32>
      %185 = vector.shape_cast %182 : vector<8x8xf32> to vector<1x8x8xf32>
      tpu.vector_store %arg7[%c3_144, %c0_145, %c0_146], %185 {strides = array<i32>} : memref<4x8x8xf32, #tpu.memory_space<vmem>>, vector<1x8x8xf32>,
      %cst_147 = arith.constant 0xFF800000 : f32
      %186 = vector.broadcast %cst_147 : f32 to vector<4x8x1xf32>
      %c0_148 = arith.constant 0 : index
      %c0_149 = arith.constant 0 : index
      %c0_150 = arith.constant 0 : index
      %187 = vector.load %arg8[%c0_148, %c0_149, %c0_150] : memref<4x8x1xf32, #tpu.memory_space<vmem>>, vector<4x8x1xf32>
      tpu.vector_store %arg8[%c0_148, %c0_149, %c0_150], %186 {strides = array<i32>} : memref<4x8x1xf32, #tpu.memory_space<vmem>>, vector<4x8x1xf32>,
      %cst_151 = arith.constant 0.000000e+00 : f32
      %188 = vector.broadcast %cst_151 : f32 to vector<4x8x1xf32>
      %c0_152 = arith.constant 0 : index
      %c0_153 = arith.constant 0 : index
      %c0_154 = arith.constant 0 : index
      %189 = vector.load %arg9[%c0_152, %c0_153, %c0_154] : memref<4x8x1xf32, #tpu.memory_space<vmem>>, vector<4x8x1xf32>
      tpu.vector_store %arg9[%c0_152, %c0_153, %c0_154], %188 {strides = array<i32>} : memref<4x8x1xf32, #tpu.memory_space<vmem>>, vector<4x8x1xf32>,
      %cst_155 = arith.constant 0.000000e+00 : f32
      %190 = vector.broadcast %cst_155 : f32 to vector<4x8x8xf32>
      %c0_156 = arith.constant 0 : index
      %c0_157 = arith.constant 0 : index
      %c0_158 = arith.constant 0 : index
      %191 = vector.load %arg10[%c0_156, %c0_157, %c0_158] : memref<4x8x8xf32, #tpu.memory_space<vmem>>, vector<4x8x8xf32>
      tpu.vector_store %arg10[%c0_156, %c0_157, %c0_158], %190 {strides = array<i32>} : memref<4x8x8xf32, #tpu.memory_space<vmem>>, vector<4x8x8xf32>,
    } else {
    }
    %c0 = arith.constant 0 : index
    %c0_1 = arith.constant 0 : index
    %c0_2 = arith.constant 0 : index
    %3 = vector.load %arg7[%c0, %c0_1, %c0_2] : memref<4x8x8xf32, #tpu.memory_space<vmem>>, vector<1x8x8xf32>
    %4 = vector.shape_cast %3 : vector<1x8x8xf32> to vector<8x8xf32>
    %c0_3 = arith.constant 0 : index
    %c0_4 = arith.constant 0 : index
    %c0_5 = arith.constant 0 : index
    %5 = vector.load %arg4[%c0_3, %c0_4, %c0_5] : memref<1x16x32xf32, #tpu.memory_space<vmem>>, vector<1x16x8xf32>
    %6 = vector.shape_cast %5 : vector<1x16x8xf32> to vector<16x8xf32>
    %c0_6 = arith.constant 0 : index
    %c0_7 = arith.constant 0 : index
    %c0_8 = arith.constant 0 : index
    %7 = vector.load %arg5[%c0_6, %c0_7, %c0_8] : memref<1x16x32xf32, #tpu.memory_space<vmem>>, vector<1x16x8xf32>
    %8 = vector.shape_cast %7 : vector<1x16x8xf32> to vector<16x8xf32>
    %cst = arith.constant dense<0.000000e+00> : vector<8x16xf32>
    %9 = tpu.matmul %4, %6, %cst {dimension_numbers = #tpu.dot_dimension_numbers<[1], [1], [0], [0], [0, 0, 1, 0], [], []>} : vector<8x8xf32>, vector<16x8xf32>, vector<8x16xf32> -> vector<8x16xf32>
    %c0_9 = arith.constant 0 : index
    %c0_10 = arith.constant 0 : index
    %c0_11 = arith.constant 0 : index
    %10 = vector.load %arg8[%c0_9, %c0_10, %c0_11] : memref<4x8x1xf32, #tpu.memory_space<vmem>>, vector<1x8x1xf32>
    %11 = vector.shape_cast %10 : vector<1x8x1xf32> to vector<8x1xf32>
    %cst_12 = arith.constant dense<0xFF800000> : vector<8xf32>
    %12 = vector.multi_reduction <maximumf>, %9, %cst_12 [1] : vector<8x16xf32> to vector<8xf32>
    %13 = vector.shape_cast %12 : vector<8xf32> to vector<8x1xf32>
    %14 = arith.maximumf %11, %13 : vector<8x1xf32>
    %15 = arith.subf %11, %14 : vector<8x1xf32>
    %16 = math.exp %15 : vector<8x1xf32>
    %17 = vector.broadcast %14 : vector<8x1xf32> to vector<8x16xf32>
    %18 = arith.subf %9, %17 : vector<8x16xf32>
    %19 = math.exp %18 : vector<8x16xf32>
    %c0_13 = arith.constant 0 : index
    %c0_14 = arith.constant 0 : index
    %c0_15 = arith.constant 0 : index
    %20 = vector.load %arg9[%c0_13, %c0_14, %c0_15] : memref<4x8x1xf32, #tpu.memory_space<vmem>>, vector<1x8x1xf32>
    %21 = vector.shape_cast %20 : vector<1x8x1xf32> to vector<8x1xf32>
    %22 = arith.mulf %16, %21 : vector<8x1xf32>
    %cst_16 = arith.constant dense<0.000000e+00> : vector<8xf32>
    %23 = vector.multi_reduction <add>, %19, %cst_16 [1] : vector<8x16xf32> to vector<8xf32>
    %24 = vector.shape_cast %23 : vector<8xf32> to vector<8x1xf32>
    %25 = arith.addf %22, %24 : vector<8x1xf32>
    %c0_17 = arith.constant 0 : index
    %c0_18 = arith.constant 0 : index
    %c0_19 = arith.constant 0 : index
    %26 = vector.load %arg9[%c0_17, %c0_18, %c0_19] : memref<4x8x1xf32, #tpu.memory_space<vmem>>, vector<1x8x1xf32>
    %27 = vector.shape_cast %26 : vector<1x8x1xf32> to vector<8x1xf32>
    %28 = vector.shape_cast %25 : vector<8x1xf32> to vector<1x8x1xf32>
    tpu.vector_store %arg9[%c0_17, %c0_18, %c0_19], %28 {strides = array<i32>} : memref<4x8x1xf32, #tpu.memory_space<vmem>>, vector<1x8x1xf32>,
    %cst_20 = arith.constant dense<0.000000e+00> : vector<8x8xf32>
    %29 = tpu.matmul %19, %8, %cst_20 {dimension_numbers = #tpu.dot_dimension_numbers<[1], [0], [0], [1], [0, 0, 1, 1], [], []>} : vector<8x16xf32>, vector<16x8xf32>, vector<8x8xf32> -> vector<8x8xf32>
    %c0_21 = arith.constant 0 : index
    %c0_22 = arith.constant 0 : index
    %c0_23 = arith.constant 0 : index
    %30 = vector.load %arg10[%c0_21, %c0_22, %c0_23] : memref<4x8x8xf32, #tpu.memory_space<vmem>>, vector<1x8x8xf32>
    %31 = vector.shape_cast %30 : vector<1x8x8xf32> to vector<8x8xf32>
    %32 = vector.broadcast %16 : vector<8x1xf32> to vector<8x8xf32>
    %33 = arith.mulf %32, %31 : vector<8x8xf32>
    %34 = arith.addf %33, %29 : vector<8x8xf32>
    %c0_24 = arith.constant 0 : index
    %c0_25 = arith.constant 0 : index
    %c0_26 = arith.constant 0 : index
    %35 = vector.load %arg10[%c0_24, %c0_25, %c0_26] : memref<4x8x8xf32, #tpu.memory_space<vmem>>, vector<1x8x8xf32>
    %36 = vector.shape_cast %35 : vector<1x8x8xf32> to vector<8x8xf32>
    %37 = vector.shape_cast %34 : vector<8x8xf32> to vector<1x8x8xf32>
    tpu.vector_store %arg10[%c0_24, %c0_25, %c0_26], %37 {strides = array<i32>} : memref<4x8x8xf32, #tpu.memory_space<vmem>>, vector<1x8x8xf32>,
    %c0_27 = arith.constant 0 : index
    %c0_28 = arith.constant 0 : index
    %c0_29 = arith.constant 0 : index
    %38 = vector.load %arg8[%c0_27, %c0_28, %c0_29] : memref<4x8x1xf32, #tpu.memory_space<vmem>>, vector<1x8x1xf32>
    %39 = vector.shape_cast %38 : vector<1x8x1xf32> to vector<8x1xf32>
    %40 = vector.shape_cast %14 : vector<8x1xf32> to vector<1x8x1xf32>
    tpu.vector_store %arg8[%c0_27, %c0_28, %c0_29], %40 {strides = array<i32>} : memref<4x8x1xf32, #tpu.memory_space<vmem>>, vector<1x8x1xf32>,
    %c1 = arith.constant 1 : index
    %c0_30 = arith.constant 0 : index
    %c0_31 = arith.constant 0 : index
    %41 = vector.load %arg7[%c1, %c0_30, %c0_31] : memref<4x8x8xf32, #tpu.memory_space<vmem>>, vector<1x8x8xf32>
    %42 = vector.shape_cast %41 : vector<1x8x8xf32> to vector<8x8xf32>
    %c0_32 = arith.constant 0 : index
    %c0_33 = arith.constant 0 : index
    %c8 = arith.constant 8 : index
    %43 = vector.load %arg4[%c0_32, %c0_33, %c8] : memref<1x16x32xf32, #tpu.memory_space<vmem>>, vector<1x16x8xf32>
    %44 = vector.shape_cast %43 : vector<1x16x8xf32> to vector<16x8xf32>
    %c0_34 = arith.constant 0 : index
    %c0_35 = arith.constant 0 : index
    %c8_36 = arith.constant 8 : index
    %45 = vector.load %arg5[%c0_34, %c0_35, %c8_36] : memref<1x16x32xf32, #tpu.memory_space<vmem>>, vector<1x16x8xf32>
    %46 = vector.shape_cast %45 : vector<1x16x8xf32> to vector<16x8xf32>
    %cst_37 = arith.constant dense<0.000000e+00> : vector<8x16xf32>
    %47 = tpu.matmul %42, %44, %cst_37 {dimension_numbers = #tpu.dot_dimension_numbers<[1], [1], [0], [0], [0, 0, 1, 0], [], []>} : vector<8x8xf32>, vector<16x8xf32>, vector<8x16xf32> -> vector<8x16xf32>
    %c1_38 = arith.constant 1 : index
    %c0_39 = arith.constant 0 : index
    %c0_40 = arith.constant 0 : index
    %48 = vector.load %arg8[%c1_38, %c0_39, %c0_40] : memref<4x8x1xf32, #tpu.memory_space<vmem>>, vector<1x8x1xf32>
    %49 = vector.shape_cast %48 : vector<1x8x1xf32> to vector<8x1xf32>
    %cst_41 = arith.constant dense<0xFF800000> : vector<8xf32>
    %50 = vector.multi_reduction <maximumf>, %47, %cst_41 [1] : vector<8x16xf32> to vector<8xf32>
    %51 = vector.shape_cast %50 : vector<8xf32> to vector<8x1xf32>
    %52 = arith.maximumf %49, %51 : vector<8x1xf32>
    %53 = arith.subf %49, %52 : vector<8x1xf32>
    %54 = math.exp %53 : vector<8x1xf32>
    %55 = vector.broadcast %52 : vector<8x1xf32> to vector<8x16xf32>
    %56 = arith.subf %47, %55 : vector<8x16xf32>
    %57 = math.exp %56 : vector<8x16xf32>
    %c1_42 = arith.constant 1 : index
    %c0_43 = arith.constant 0 : index
    %c0_44 = arith.constant 0 : index
    %58 = vector.load %arg9[%c1_42, %c0_43, %c0_44] : memref<4x8x1xf32, #tpu.memory_space<vmem>>, vector<1x8x1xf32>
    %59 = vector.shape_cast %58 : vector<1x8x1xf32> to vector<8x1xf32>
    %60 = arith.mulf %54, %59 : vector<8x1xf32>
    %cst_45 = arith.constant dense<0.000000e+00> : vector<8xf32>
    %61 = vector.multi_reduction <add>, %57, %cst_45 [1] : vector<8x16xf32> to vector<8xf32>
    %62 = vector.shape_cast %61 : vector<8xf32> to vector<8x1xf32>
    %63 = arith.addf %60, %62 : vector<8x1xf32>
    %c1_46 = arith.constant 1 : index
    %c0_47 = arith.constant 0 : index
    %c0_48 = arith.constant 0 : index
    %64 = vector.load %arg9[%c1_46, %c0_47, %c0_48] : memref<4x8x1xf32, #tpu.memory_space<vmem>>, vector<1x8x1xf32>
    %65 = vector.shape_cast %64 : vector<1x8x1xf32> to vector<8x1xf32>
    %66 = vector.shape_cast %63 : vector<8x1xf32> to vector<1x8x1xf32>
    tpu.vector_store %arg9[%c1_46, %c0_47, %c0_48], %66 {strides = array<i32>} : memref<4x8x1xf32, #tpu.memory_space<vmem>>, vector<1x8x1xf32>,
    %cst_49 = arith.constant dense<0.000000e+00> : vector<8x8xf32>
    %67 = tpu.matmul %57, %46, %cst_49 {dimension_numbers = #tpu.dot_dimension_numbers<[1], [0], [0], [1], [0, 0, 1, 1], [], []>} : vector<8x16xf32>, vector<16x8xf32>, vector<8x8xf32> -> vector<8x8xf32>
    %c1_50 = arith.constant 1 : index
    %c0_51 = arith.constant 0 : index
    %c0_52 = arith.constant 0 : index
    %68 = vector.load %arg10[%c1_50, %c0_51, %c0_52] : memref<4x8x8xf32, #tpu.memory_space<vmem>>, vector<1x8x8xf32>
    %69 = vector.shape_cast %68 : vector<1x8x8xf32> to vector<8x8xf32>
    %70 = vector.broadcast %54 : vector<8x1xf32> to vector<8x8xf32>
    %71 = arith.mulf %70, %69 : vector<8x8xf32>
    %72 = arith.addf %71, %67 : vector<8x8xf32>
    %c1_53 = arith.constant 1 : index
    %c0_54 = arith.constant 0 : index
    %c0_55 = arith.constant 0 : index
    %73 = vector.load %arg10[%c1_53, %c0_54, %c0_55] : memref<4x8x8xf32, #tpu.memory_space<vmem>>, vector<1x8x8xf32>
    %74 = vector.shape_cast %73 : vector<1x8x8xf32> to vector<8x8xf32>
    %75 = vector.shape_cast %72 : vector<8x8xf32> to vector<1x8x8xf32>
    tpu.vector_store %arg10[%c1_53, %c0_54, %c0_55], %75 {strides = array<i32>} : memref<4x8x8xf32, #tpu.memory_space<vmem>>, vector<1x8x8xf32>,
    %c1_56 = arith.constant 1 : index
    %c0_57 = arith.constant 0 : index
    %c0_58 = arith.constant 0 : index
    %76 = vector.load %arg8[%c1_56, %c0_57, %c0_58] : memref<4x8x1xf32, #tpu.memory_space<vmem>>, vector<1x8x1xf32>
    %77 = vector.shape_cast %76 : vector<1x8x1xf32> to vector<8x1xf32>
    %78 = vector.shape_cast %52 : vector<8x1xf32> to vector<1x8x1xf32>
    tpu.vector_store %arg8[%c1_56, %c0_57, %c0_58], %78 {strides = array<i32>} : memref<4x8x1xf32, #tpu.memory_space<vmem>>, vector<1x8x1xf32>,
    %c2 = arith.constant 2 : index
    %c0_59 = arith.constant 0 : index
    %c0_60 = arith.constant 0 : index
    %79 = vector.load %arg7[%c2, %c0_59, %c0_60] : memref<4x8x8xf32, #tpu.memory_space<vmem>>, vector<1x8x8xf32>
    %80 = vector.shape_cast %79 : vector<1x8x8xf32> to vector<8x8xf32>
    %c0_61 = arith.constant 0 : index
    %c0_62 = arith.constant 0 : index
    %c16 = arith.constant 16 : index
    %81 = vector.load %arg4[%c0_61, %c0_62, %c16] : memref<1x16x32xf32, #tpu.memory_space<vmem>>, vector<1x16x8xf32>
    %82 = vector.shape_cast %81 : vector<1x16x8xf32> to vector<16x8xf32>
    %c0_63 = arith.constant 0 : index
    %c0_64 = arith.constant 0 : index
    %c16_65 = arith.constant 16 : index
    %83 = vector.load %arg5[%c0_63, %c0_64, %c16_65] : memref<1x16x32xf32, #tpu.memory_space<vmem>>, vector<1x16x8xf32>
    %84 = vector.shape_cast %83 : vector<1x16x8xf32> to vector<16x8xf32>
    %cst_66 = arith.constant dense<0.000000e+00> : vector<8x16xf32>
    %85 = tpu.matmul %80, %82, %cst_66 {dimension_numbers = #tpu.dot_dimension_numbers<[1], [1], [0], [0], [0, 0, 1, 0], [], []>} : vector<8x8xf32>, vector<16x8xf32>, vector<8x16xf32> -> vector<8x16xf32>
    %c2_67 = arith.constant 2 : index
    %c0_68 = arith.constant 0 : index
    %c0_69 = arith.constant 0 : index
    %86 = vector.load %arg8[%c2_67, %c0_68, %c0_69] : memref<4x8x1xf32, #tpu.memory_space<vmem>>, vector<1x8x1xf32>
    %87 = vector.shape_cast %86 : vector<1x8x1xf32> to vector<8x1xf32>
    %cst_70 = arith.constant dense<0xFF800000> : vector<8xf32>
    %88 = vector.multi_reduction <maximumf>, %85, %cst_70 [1] : vector<8x16xf32> to vector<8xf32>
    %89 = vector.shape_cast %88 : vector<8xf32> to vector<8x1xf32>
    %90 = arith.maximumf %87, %89 : vector<8x1xf32>
    %91 = arith.subf %87, %90 : vector<8x1xf32>
    %92 = math.exp %91 : vector<8x1xf32>
    %93 = vector.broadcast %90 : vector<8x1xf32> to vector<8x16xf32>
    %94 = arith.subf %85, %93 : vector<8x16xf32>
    %95 = math.exp %94 : vector<8x16xf32>
    %c2_71 = arith.constant 2 : index
    %c0_72 = arith.constant 0 : index
    %c0_73 = arith.constant 0 : index
    %96 = vector.load %arg9[%c2_71, %c0_72, %c0_73] : memref<4x8x1xf32, #tpu.memory_space<vmem>>, vector<1x8x1xf32>
    %97 = vector.shape_cast %96 : vector<1x8x1xf32> to vector<8x1xf32>
    %98 = arith.mulf %92, %97 : vector<8x1xf32>
    %cst_74 = arith.constant dense<0.000000e+00> : vector<8xf32>
    %99 = vector.multi_reduction <add>, %95, %cst_74 [1] : vector<8x16xf32> to vector<8xf32>
    %100 = vector.shape_cast %99 : vector<8xf32> to vector<8x1xf32>
    %101 = arith.addf %98, %100 : vector<8x1xf32>
    %c2_75 = arith.constant 2 : index
    %c0_76 = arith.constant 0 : index
    %c0_77 = arith.constant 0 : index
    %102 = vector.load %arg9[%c2_75, %c0_76, %c0_77] : memref<4x8x1xf32, #tpu.memory_space<vmem>>, vector<1x8x1xf32>
    %103 = vector.shape_cast %102 : vector<1x8x1xf32> to vector<8x1xf32>
    %104 = vector.shape_cast %101 : vector<8x1xf32> to vector<1x8x1xf32>
    tpu.vector_store %arg9[%c2_75, %c0_76, %c0_77], %104 {strides = array<i32>} : memref<4x8x1xf32, #tpu.memory_space<vmem>>, vector<1x8x1xf32>,
    %cst_78 = arith.constant dense<0.000000e+00> : vector<8x8xf32>
    %105 = tpu.matmul %95, %84, %cst_78 {dimension_numbers = #tpu.dot_dimension_numbers<[1], [0], [0], [1], [0, 0, 1, 1], [], []>} : vector<8x16xf32>, vector<16x8xf32>, vector<8x8xf32> -> vector<8x8xf32>
    %c2_79 = arith.constant 2 : index
    %c0_80 = arith.constant 0 : index
    %c0_81 = arith.constant 0 : index
    %106 = vector.load %arg10[%c2_79, %c0_80, %c0_81] : memref<4x8x8xf32, #tpu.memory_space<vmem>>, vector<1x8x8xf32>
    %107 = vector.shape_cast %106 : vector<1x8x8xf32> to vector<8x8xf32>
    %108 = vector.broadcast %92 : vector<8x1xf32> to vector<8x8xf32>
    %109 = arith.mulf %108, %107 : vector<8x8xf32>
    %110 = arith.addf %109, %105 : vector<8x8xf32>
    %c2_82 = arith.constant 2 : index
    %c0_83 = arith.constant 0 : index
    %c0_84 = arith.constant 0 : index
    %111 = vector.load %arg10[%c2_82, %c0_83, %c0_84] : memref<4x8x8xf32, #tpu.memory_space<vmem>>, vector<1x8x8xf32>
    %112 = vector.shape_cast %111 : vector<1x8x8xf32> to vector<8x8xf32>
    %113 = vector.shape_cast %110 : vector<8x8xf32> to vector<1x8x8xf32>
    tpu.vector_store %arg10[%c2_82, %c0_83, %c0_84], %113 {strides = array<i32>} : memref<4x8x8xf32, #tpu.memory_space<vmem>>, vector<1x8x8xf32>,
    %c2_85 = arith.constant 2 : index
    %c0_86 = arith.constant 0 : index
    %c0_87 = arith.constant 0 : index
    %114 = vector.load %arg8[%c2_85, %c0_86, %c0_87] : memref<4x8x1xf32, #tpu.memory_space<vmem>>, vector<1x8x1xf32>
    %115 = vector.shape_cast %114 : vector<1x8x1xf32> to vector<8x1xf32>
    %116 = vector.shape_cast %90 : vector<8x1xf32> to vector<1x8x1xf32>
    tpu.vector_store %arg8[%c2_85, %c0_86, %c0_87], %116 {strides = array<i32>} : memref<4x8x1xf32, #tpu.memory_space<vmem>>, vector<1x8x1xf32>,
    %c3 = arith.constant 3 : index
    %c0_88 = arith.constant 0 : index
    %c0_89 = arith.constant 0 : index
    %117 = vector.load %arg7[%c3, %c0_88, %c0_89] : memref<4x8x8xf32, #tpu.memory_space<vmem>>, vector<1x8x8xf32>
    %118 = vector.shape_cast %117 : vector<1x8x8xf32> to vector<8x8xf32>
    %c0_90 = arith.constant 0 : index
    %c0_91 = arith.constant 0 : index
    %c24 = arith.constant 24 : index
    %119 = vector.load %arg4[%c0_90, %c0_91, %c24] : memref<1x16x32xf32, #tpu.memory_space<vmem>>, vector<1x16x8xf32>
    %120 = vector.shape_cast %119 : vector<1x16x8xf32> to vector<16x8xf32>
    %c0_92 = arith.constant 0 : index
    %c0_93 = arith.constant 0 : index
    %c24_94 = arith.constant 24 : index
    %121 = vector.load %arg5[%c0_92, %c0_93, %c24_94] : memref<1x16x32xf32, #tpu.memory_space<vmem>>, vector<1x16x8xf32>
    %122 = vector.shape_cast %121 : vector<1x16x8xf32> to vector<16x8xf32>
    %cst_95 = arith.constant dense<0.000000e+00> : vector<8x16xf32>
    %123 = tpu.matmul %118, %120, %cst_95 {dimension_numbers = #tpu.dot_dimension_numbers<[1], [1], [0], [0], [0, 0, 1, 0], [], []>} : vector<8x8xf32>, vector<16x8xf32>, vector<8x16xf32> -> vector<8x16xf32>
    %c3_96 = arith.constant 3 : index
    %c0_97 = arith.constant 0 : index
    %c0_98 = arith.constant 0 : index
    %124 = vector.load %arg8[%c3_96, %c0_97, %c0_98] : memref<4x8x1xf32, #tpu.memory_space<vmem>>, vector<1x8x1xf32>
    %125 = vector.shape_cast %124 : vector<1x8x1xf32> to vector<8x1xf32>
    %cst_99 = arith.constant dense<0xFF800000> : vector<8xf32>
    %126 = vector.multi_reduction <maximumf>, %123, %cst_99 [1] : vector<8x16xf32> to vector<8xf32>
    %127 = vector.shape_cast %126 : vector<8xf32> to vector<8x1xf32>
    %128 = arith.maximumf %125, %127 : vector<8x1xf32>
    %129 = arith.subf %125, %128 : vector<8x1xf32>
    %130 = math.exp %129 : vector<8x1xf32>
    %131 = vector.broadcast %128 : vector<8x1xf32> to vector<8x16xf32>
    %132 = arith.subf %123, %131 : vector<8x16xf32>
    %133 = math.exp %132 : vector<8x16xf32>
    %c3_100 = arith.constant 3 : index
    %c0_101 = arith.constant 0 : index
    %c0_102 = arith.constant 0 : index
    %134 = vector.load %arg9[%c3_100, %c0_101, %c0_102] : memref<4x8x1xf32, #tpu.memory_space<vmem>>, vector<1x8x1xf32>
    %135 = vector.shape_cast %134 : vector<1x8x1xf32> to vector<8x1xf32>
    %136 = arith.mulf %130, %135 : vector<8x1xf32>
    %cst_103 = arith.constant dense<0.000000e+00> : vector<8xf32>
    %137 = vector.multi_reduction <add>, %133, %cst_103 [1] : vector<8x16xf32> to vector<8xf32>
    %138 = vector.shape_cast %137 : vector<8xf32> to vector<8x1xf32>
    %139 = arith.addf %136, %138 : vector<8x1xf32>
    %c3_104 = arith.constant 3 : index
    %c0_105 = arith.constant 0 : index
    %c0_106 = arith.constant 0 : index
    %140 = vector.load %arg9[%c3_104, %c0_105, %c0_106] : memref<4x8x1xf32, #tpu.memory_space<vmem>>, vector<1x8x1xf32>
    %141 = vector.shape_cast %140 : vector<1x8x1xf32> to vector<8x1xf32>
    %142 = vector.shape_cast %139 : vector<8x1xf32> to vector<1x8x1xf32>
    tpu.vector_store %arg9[%c3_104, %c0_105, %c0_106], %142 {strides = array<i32>} : memref<4x8x1xf32, #tpu.memory_space<vmem>>, vector<1x8x1xf32>,
    %cst_107 = arith.constant dense<0.000000e+00> : vector<8x8xf32>
    %143 = tpu.matmul %133, %122, %cst_107 {dimension_numbers = #tpu.dot_dimension_numbers<[1], [0], [0], [1], [0, 0, 1, 1], [], []>} : vector<8x16xf32>, vector<16x8xf32>, vector<8x8xf32> -> vector<8x8xf32>
    %c3_108 = arith.constant 3 : index
    %c0_109 = arith.constant 0 : index
    %c0_110 = arith.constant 0 : index
    %144 = vector.load %arg10[%c3_108, %c0_109, %c0_110] : memref<4x8x8xf32, #tpu.memory_space<vmem>>, vector<1x8x8xf32>
    %145 = vector.shape_cast %144 : vector<1x8x8xf32> to vector<8x8xf32>
    %146 = vector.broadcast %130 : vector<8x1xf32> to vector<8x8xf32>
    %147 = arith.mulf %146, %145 : vector<8x8xf32>
    %148 = arith.addf %147, %143 : vector<8x8xf32>
    %c3_111 = arith.constant 3 : index
    %c0_112 = arith.constant 0 : index
    %c0_113 = arith.constant 0 : index
    %149 = vector.load %arg10[%c3_111, %c0_112, %c0_113] : memref<4x8x8xf32, #tpu.memory_space<vmem>>, vector<1x8x8xf32>
    %150 = vector.shape_cast %149 : vector<1x8x8xf32> to vector<8x8xf32>
    %151 = vector.shape_cast %148 : vector<8x8xf32> to vector<1x8x8xf32>
    tpu.vector_store %arg10[%c3_111, %c0_112, %c0_113], %151 {strides = array<i32>} : memref<4x8x8xf32, #tpu.memory_space<vmem>>, vector<1x8x8xf32>,
    %c3_114 = arith.constant 3 : index
    %c0_115 = arith.constant 0 : index
    %c0_116 = arith.constant 0 : index
    %152 = vector.load %arg8[%c3_114, %c0_115, %c0_116] : memref<4x8x1xf32, #tpu.memory_space<vmem>>, vector<1x8x1xf32>
    %153 = vector.shape_cast %152 : vector<1x8x1xf32> to vector<8x1xf32>
    %154 = vector.shape_cast %128 : vector<8x1xf32> to vector<1x8x1xf32>
    tpu.vector_store %arg8[%c3_114, %c0_115, %c0_116], %154 {strides = array<i32>} : memref<4x8x1xf32, #tpu.memory_space<vmem>>, vector<1x8x1xf32>,
    %c0_i32_117 = arith.constant 0 : i32
    %155 = arith.cmpi eq, %arg2, %c0_i32_117 : i32
    %156 = arith.extui %155 : i1 to i32
    %c0_i32_118 = arith.constant 0 : i32
    %157 = arith.cmpi ne, %156, %c0_i32_118 : i32
    scf.if %157 {
      %c0_119 = arith.constant 0 : index
      %c0_120 = arith.constant 0 : index
      %c0_121 = arith.constant 0 : index
      %158 = vector.load %arg10[%c0_119, %c0_120, %c0_121] : memref<4x8x8xf32, #tpu.memory_space<vmem>>, vector<4x8x8xf32>
      %c0_122 = arith.constant 0 : index
      %c0_123 = arith.constant 0 : index
      %c0_124 = arith.constant 0 : index
      %159 = vector.load %arg9[%c0_122, %c0_123, %c0_124] : memref<4x8x1xf32, #tpu.memory_space<vmem>>, vector<4x8x1xf32>
      %160 = vector.broadcast %159 : vector<4x8x1xf32> to vector<4x8x8xf32>
      %161 = arith.divf %158, %160 : vector<4x8x8xf32>
      %162 = vector.extract_strided_slice %161 {offsets = [0, 0, 0], sizes = [1, 8, 8], strides = [1, 1, 1]} : vector<4x8x8xf32> to vector<1x8x8xf32>
      %163 = vector.shape_cast %162 : vector<1x8x8xf32> to vector<8x8xf32>
      %164 = vector.extract_strided_slice %161 {offsets = [1, 0, 0], sizes = [1, 8, 8], strides = [1, 1, 1]} : vector<4x8x8xf32> to vector<1x8x8xf32>
      %165 = vector.shape_cast %164 : vector<1x8x8xf32> to vector<8x8xf32>
      %166 = vector.extract_strided_slice %161 {offsets = [2, 0, 0], sizes = [1, 8, 8], strides = [1, 1, 1]} : vector<4x8x8xf32> to vector<1x8x8xf32>
      %167 = vector.shape_cast %166 : vector<1x8x8xf32> to vector<8x8xf32>
      %168 = vector.extract_strided_slice %161 {offsets = [3, 0, 0], sizes = [1, 8, 8], strides = [1, 1, 1]} : vector<4x8x8xf32> to vector<1x8x8xf32>
      %169 = vector.shape_cast %168 : vector<1x8x8xf32> to vector<8x8xf32>
      %170 = tpu.concatenate %163, %165, %167, %169 in 1 : vector<8x8xf32>, vector<8x8xf32>, vector<8x8xf32>, vector<8x8xf32> -> vector<8x32xf32>
      %c0_125 = arith.constant 0 : index
      %c0_126 = arith.constant 0 : index
      %c0_127 = arith.constant 0 : index
      %171 = vector.load %arg6[%c0_125, %c0_126, %c0_127] : memref<1x8x32xf32, #tpu.memory_space<vmem>>, vector<1x8x32xf32>
      %172 = vector.shape_cast %171 : vector<1x8x32xf32> to vector<8x32xf32>
      %173 = vector.shape_cast %170 : vector<8x32xf32> to vector<1x8x32xf32>
      tpu.vector_store %arg6[%c0_125, %c0_126, %c0_127], %173 {strides = array<i32>} : memref<1x8x32xf32, #tpu.memory_space<vmem>>, vector<1x8x32xf32>,
    } else {
    }
    return
  }
  func.func @transform_0(%arg0: i32, %arg1: i32, %arg2: i32) -> (i32, i32, i32) {
    %c0_i32 = arith.constant 0 : i32
    %c0_i32_0 = arith.constant 0 : i32
    return %arg0, %arg1, %c0_i32 : i32, i32, i32
  }
  func.func @transform_1(%arg0: i32, %arg1: i32, %arg2: i32) -> (i32, i32, i32) {
    %c0_i32 = arith.constant 0 : i32
    %c0_i32_0 = arith.constant 0 : i32
    return %arg0, %arg2, %c0_i32 : i32, i32, i32
  }
  func.func @transform_2(%arg0: i32, %arg1: i32, %arg2: i32) -> (i32, i32, i32) {
    %c0_i32 = arith.constant 0 : i32
    %c0_i32_0 = arith.constant 0 : i32
    return %arg0, %arg2, %c0_i32 : i32, i32, i32
  }
  func.func @transform_3(%arg0: i32, %arg1: i32, %arg2: i32) -> (i32, i32, i32) {
    %c0_i32 = arith.constant 0 : i32
    %c0_i32_0 = arith.constant 0 : i32
    return %arg0, %arg1, %c0_i32 : i32, i32, i32
  }
}

</mosaic_0001>

<bundles_post_ra>
// kernel: tpu_custom_call.1
= control target key start
LH: loop header
LB: loop body
LE: loop exit
PB: predicated region body
PF: predicated region fallthrough
CT: control target
= control target key end

     0   :  { %s1640_s0 = inlined_call_operand.hbm [shape: f32[2,8,32], index: 0, kind: input, shape index: {}]   ;;  %s1641_s1 = inlined_call_operand.hbm [shape: f32[2,16,32], index: 1, kind: input, shape index: {}]   ;;  %s1642_s2 = inlined_call_operand.hbm [shape: f32[2,16,32], index: 2, kind: input, shape index: {}]   ;;  %s1643_s3 = inlined_call_operand.hbm [shape: f32[2,8,32], index: 3, kind: output, shape index: {}]  }
   0x1   :  { %1646 = sst [smem:[#allocation19_spill]] %s1641_s1 }
   0x2   :  { %8 = vsyncpa [#allocation7], 0 }
   0x3   :  { %10 = vsyncpa [#allocation7 + $0x1], 0 }
   0x4   :  { %11 = vsyncpa [#allocation10], 0 }
   0x5   :  { %13 = vsyncpa [#allocation10 + $0x1], 0 }
   0x6   :  { %14 = vsyncpa [#allocation8], 0 }
   0x7   :  { %16 = vsyncpa [#allocation8 + $0x1], 0  ;;  %s1390_s12 = smov 0   ;;  %s1392_s13 = smov 0  }
   0x8   :  { %s1394_s14 = smov 0   ;;  %s1396_s15 = smov 0  }
   0x9   :  { %s1398_s16 = smov 0   ;;  %s1400_s17 = smov 0  }
   0xa LB: > { %1647 = sst [smem:[#allocation16_spill]] %s1345_s14  ;;  %s1421_s18 = sadd.s32 4294967295, %s1357_s17   ;;  %s1357_s17 = sphi %s1400_s17, %s22_s17   ;;  %s1353_s16 = sphi %s1398_s16, %s1662_s16   ;;  %s1349_s15 = sphi %s1396_s15, %s1661_s15   ;;  %s1345_s14 = sphi %s1394_s14, %s1657_s14   ;;  %s1341_s13 = sphi %s1392_s13, %s1660_s13   ;;  %s1337_s12 = sphi %s1390_s12, %s1659_s12  }
   0xb   : > { %s1018_s19 = sadd.s32 4294967294, %s1357_s17   ;;  %s41_s20 = sadd.s32 1, %s1353_s16 }
   0xc   : > { %s50_s21 = sadd.s32 1, %s1345_s14  ;;  %p43_p0 = scmp.ge.s32.totalorder %s41_s20, 2 }
   0xd   : > { %p57_p1 = scmp.ne.s32.totalorder %s1345_s14, %s1341_s13  ;;  %p58_p2 = scmp.eq.s32.totalorder %s1357_s17, 0 }
   0xe   : > { %p63_p3 = scmp.ne.s32.totalorder %s1341_s13, %s1337_s12  ;;  %s1664_s20 = smov (%p43_p0, %s41_s20), 0 }
   0xf   : > { %1648 = sst [smem:[#allocation17_spill]] %s1664_s20  ;;  %p1433_p4 = por %p58_p2, %p57_p1 }
  0x10   : > { %p64_p5 = scmp.eq.s32.totalorder %s1421_s18, 0  ;;  %s45_s23 = ssub.s32 %s1353_s16, %s1664_s20 }
  0x11   : > { %p145_p6 = scmp.eq.s32.totalorder %s1421_s18, 1  ;;  %p48_p7 = scmp.eq.s32.totalorder %s45_s23, 0 }
  0x12   : > { %p1441_p8 = por %p64_p5, %p63_p3  ;;  %p151_p10 = scmp.eq.s32.totalorder %s1018_s19, 1 }
  0x13   : > { %p1445_p9 = por %p145_p6, %p57_p1  ;;  %p1020_p12 = scmp.ge.s32.totalorder %s1357_s17, 2 }
  0x14   : > { %s1450_s26 = scalar_select %p48_p7, %s1345_s14, %s50_s21  }
  0x15   : > { %p1452_p11 = por %p151_p10, %p63_p3  ;;  %p1078_p13 = scmp.lt.s32.totalorder %s1357_s17, 2 }
  0x16   : > { %1652 = sst [smem:[#allocation18_spill]] %s1450_s26  ;;  %s1459_s28 = sand.u32 1, %s1345_s14  }
  0x17   : > { %s191_s29 = sand.u32 1, %s1357_s17   ;;  %s1023_s30 = sshll.u32 %s1459_s28, 4 }
  0x18   : > { %p1465_p0 = pnand %p1078_p13, %p1433_p4  ;;  %s1054_s5 = sshll.u32 %s1353_s16, 4 }
  0x19   : > { %s1655_s1 = sld [smem:[#allocation19_spill]]  ;;  %s195_s10 = scalar_lea.vmem [#allocation9], %s1023_s30 }
  0x1a   : > { %s205_s11 = sshll.u32 %s195_s10, 4  ;;  %s192_s19 = scalar_lea.sflag [#allocation10], %s191_s29  ;;  %s206_s11 = int_to_ptr.vmem [resolvable:$true] %s205_s11 }
  0x1b   : > { %s1359_s21 = smov 128   ;;  %s1360_s22 = smov 8  }
  0x1c   : > { %s226_s26 = scalar_lea.hbm %s1642_s2, %s1054_s5  ;;  %s219_s7 = scalar_lea.vmem [#allocation11], %s1023_s30 }
  0x1d   : > { %s227_s6 = sshll.u32 %s226_s26, 4  ;;  %p1029_p1 = scmp.ge.s32.totalorder %s1357_s17, 1  ;;  %s228_s6 = int_to_ptr.hbm [resolvable:$true] %s227_s6 }
  0x1e   : > { %p237_p2 = scmp.lt.s32.totalorder %s1357_s17, 3  ;;  %s1021_s29 = sshll.u32 %s1459_s28, 3 }
  0x1f   : > { %s202_s8 = scalar_lea.hbm %s1655_s1, %s1054_s5  ;;  %s1022_s10 = sshll.u32 %s1353_s16, 3 }
  0x20   : > { %s203_s9 = sshll.u32 %s202_s8, 4  ;;  %s229_s8 = sshll.u32 %s219_s7, 4  ;;  %s204_s9 = int_to_ptr.hbm [resolvable:$true] %s203_s9  ;;  %s230_s8 = int_to_ptr.vmem [resolvable:$true] %s229_s8 }
  0x21   : > { %1070 = dma.hbm_to_vmem [thread:$0]  (!%p1465_p0), %s204_s9, 256, %s206_s11, %s192_s19, %s1359_s21, %s1359_s21, %s1360_s22  }
  0x22   : > { %p238_p3 = pnand %p1029_p1, %p237_p2  ;;  %s180_s9 = scalar_lea.hbm %s1640_s0, %s1022_s10 }
  0x23   : > { %s182_s11 = sshll.u32 %s180_s9, 4  ;;  %s175_s20 = scalar_lea.vmem [#allocation6], %s1021_s29  ;;  %s183_s11 = int_to_ptr.hbm [resolvable:$true] %s182_s11 }
  0x24   : > { %s184_s5 = sshll.u32 %s175_s20, 4  ;;  %s172_s26 = scalar_lea.sflag [#allocation7], %s1459_s28  ;;  %s185_s5 = int_to_ptr.vmem [resolvable:$true] %s184_s5 }
  0x25   : > { %1067 = dma.hbm_to_vmem [thread:$0]  (!%p1465_p0), %s183_s11, 128, %s185_s5, %s172_s26  }
  0x26   : > { %1073 = dma.hbm_to_vmem [thread:$0]  (!%p1465_p0), %s228_s6, 256, %s230_s8, %s192_s19, %s1359_s21, %s1359_s21, %s1360_s22  }
  0x27   : > { %241 = sbr.rel (%p238_p3) target bundleno = 1170 (0x492), region = 32  ;;  %s1491_s30 = sand.u32 (!%p238_p3), 1, %s1341_s13  }
  0x28   : > { %s1030_s1 = sshll.u32 (!%p238_p3), %s1491_s30, 3  ;;  %s244_s14 = scalar_lea.sflag (!%p238_p3), [#allocation7], %s1491_s30 }
  0x29   : > { %s247_s23 = scalar_lea.vmem (!%p238_p3), [#allocation6], %s1030_s1 }
  0x2c   : > { %1324 = dma.done.wait (%p1441_p8), %s244_s14, 128  }
  0x2d   : > { %1326 = vsyncadd (%p1441_p8), %s244_s14, 4294967168  ;;  %s253_s28 = sand.u32 1, %s1421_s18   ;;  %s1031_s4 = sshll.u32 %s1491_s30, 4 }
  0x2e   : > { %s254_s19 = scalar_lea.sflag [#allocation10], %s253_s28  ;;  %s257_s21 = scalar_lea.vmem [#allocation9], %s1031_s4 }
  0x2f   : > { %1328 = dma.done.wait (%p1441_p8), %s254_s19, 512  }
  0x30   : > { %1330 = vsyncadd (%p1441_p8), %s254_s19, 4294966784  ;;  %vm309_vm0 = vcmask 64512   ;;  %v350_v0 = vld [vmem:[%s257_s21 + $0x8] sm:$0xff]  ;;  %v349_v3 = vld [vmem:[%s257_s21] sm:$0xff]  ;;  %s1361_s18 = smov 120   ;;  %vm335_vm1 = vcmask 7168  }
  0x31   : > { %v307_v1 = vld [vmem:[%s247_s23] sm:$0xff]  ;;  %1034 = vmatpush.xpose.msk.msra.mxu0 %vm309_vm0, %v350_v0  ;;  %451 = vrot.lane.b32.xlu1 %v350_v0, %s1361_s18  ;;  %v1362_v5 = vmov -inf   ;;  %vm384_vm2 = vcmask 130048   ;;  %s1363_s24 = smov 112   ;;  %s1364_s22 = smov 104   ;;  %v1365_v8 = vmov 0  }
  0x32   : > { %v308_v2 = vmul.f32 0.35355338, %v307_v1  ;;  %449 = vrot.lane.b32.xlu2 %v349_v3, %s1361_s18  ;;  %336 = vst.msk [vmem:[#allocation3] sm:$0xff] %vm335_vm1, %v1362_v5  ;;  %1139 = vset.pattern.permute.xlu1 %v1365_v8  ;;  %v1366_v9 = vmov 0.0   ;;  %s267_s6 = scalar_lea.vmem [#allocation11], %s1031_s4  ;;  %s1367_s7 = smov 8  }
  0x33   : > { %337 = vst.msk [vmem:[#allocation3 + $0x8] sm:$0xff] %vm335_vm1, %v1362_v5  ;;  %1140 = vset.pattern.permute.xlu2 %v1365_v8  ;;  %1146 = vset.pattern.permute.xlu0 %v1365_v8  ;;  %v352_v20 = vld [vmem:[%s267_s6 + $0x8] sm:$0xff]  ;;  %v351_v21 = vld [vmem:[%s267_s6] sm:$0xff]  ;;  %s1368_s8 = smov 16   ;;  %s1369_s29 = smov 24  }
  0x34   : > { %310 = vst.msk [vmem:[#allocation2] sm:$0xff] %vm309_vm0, %v308_v2  ;;  %425 = vmatpush.msra.mxu1 %v352_v20  ;;  %v1141_v28 = vpack.i.bf16 %v351_v21, %v352_v20  ;;  %s1051_s10 = sshll.u32 %s1349_s15, 3  ;;  %s300_s5 = scalar_lea.vmem [#allocation12], %s1030_s1 }
  0x35   : > { %1035 = vmatpush.xpose.msk.msra.mxu0 %vm309_vm0, %v349_v3  ;;  %338 = vst.msk [vmem:[#allocation3 + $0x10] sm:$0xff] %vm335_vm1, %v1362_v5  ;;  %s880_s20 = scalar_lea.hbm %s1643_s3, %s1051_s10  ;;  %s882_s26 = sshll.u32 %s300_s5, 4  ;;  %s883_s26 = int_to_ptr.vmem [resolvable:$true] %s882_s26 }
  0x36   : > { %339 = vst.msk [vmem:[#allocation3 + $0x18] sm:$0xff] %vm335_vm1, %v1362_v5  ;;  %426 = vmatpush.msra.mxu1 %v351_v21  ;;  %s884_s14 = sshll.u32 %s880_s20, 4  ;;  %s869_s15 = scalar_lea.sflag [#allocation8], %s1491_s30  ;;  %s885_s14 = int_to_ptr.hbm [resolvable:$true] %s884_s14 }
  0x37   : > { %340 = vst.msk [vmem:[#allocation4] sm:$0xff] %vm335_vm1, %v1366_v9  ;;  %s1285_s23 = sshra.s32 %s885_s14, 4  ;;  %s1291_s19 = scalar_lea.hbm %s1643_s3, 16  ;;  %s1286_s23 = int_to_ptr.hbm [resolvable:$true] %s1285_s23 }
  0x38   : > { %341 = vst.msk [vmem:[#allocation4 + $0x8] sm:$0xff] %vm335_vm1, %v1366_v9  ;;  %s1287_s28 = scalar_lea.hbm %s1286_s23, 8  ;;  %p1292_p7 = scmp.lt.s32.totalorder %s1286_s23, %s1643_s3 }
  0x39   : > { %342 = vst.msk [vmem:[#allocation4 + $0x10] sm:$0xff] %vm335_vm1, %v1366_v9  ;;  %v383_v13 = vld [vmem:[#allocation3] sm:$0xff]  ;;  %p1288_p4 = scmp.ne.s32.totalorder %s1286_s23, %s1287_s28  ;;  %p1293_p8 = scmp.lt.s32.totalorder %s1291_s19, %s1287_s28 }
  0x3a   : > { %322 = vrot.lane.b32.xlu2 %v308_v2, %s1363_s24  ;;  %343 = vst.msk [vmem:[#allocation4 + $0x18] sm:$0xff] %vm335_vm1, %v1366_v9  ;;  %v1562_v41 = vld [vmem:[#allocation3 + $0x8] sm:$0xff] }
  0x3b   : > { %v348_v4 = vld [vmem:[#allocation2] sm:$0xff]  ;;  %344 = vst.msk [vmem:[#allocation5] sm:$0xff] %vm309_vm0, %v1366_v9  ;;  %p1289_p5 = pnand %p1288_p4, %p1445_p9  ;;  %p1294_p10 = por %p1293_p8, %p1292_p7 }
  0x3c   : > { %1036 = vmatmul.msk.f32.vlgmr.msra.gmra.mxu0 %vm309_vm0, %v348_v4  ;;  %345 = vst.msk [vmem:[#allocation5 + $0x8] sm:$0xff] %vm309_vm0, %v1366_v9  ;;  %v587_v55 = vld [vmem:[#allocation3 + $0x10] sm:$0xff] }
  0x3d   : > { %346 = vst.msk [vmem:[#allocation5 + $0x10] sm:$0xff] %vm309_vm0, %v1366_v9  ;;  %v693_v58 = vld [vmem:[#allocation3 + $0x18] sm:$0xff]  ;;  %p1290_p6 = pneg %p1289_p5 }
  0x3e   : > { %347 = vst.msk [vmem:[#allocation5 + $0x18] sm:$0xff] %vm309_vm0, %v1366_v9  ;;  %v400_v49 = vld [vmem:[#allocation4] sm:$0xff] }
  0x3f   : > { %p1295_p13 = pnand %p1294_p10, %p1290_p6 }
  0x42   : > { %557 = vrot.lane.b32.xlu2 %v350_v0, %s1363_s24 }
  0x4a   : > { %555 = vrot.lane.b32.xlu2 %v349_v3, %s1363_s24 }
  0x8c   : > { %v450_v11 = vpop.permute.xlu2 %449 }
  0x94   : > { %v323_v12 = vpop.permute.xlu2 %322 }
  0x95   : > { %326 = vst.msk [vmem:[#allocation2 + $0x10] sm:$0xff] %vm309_vm0, %v323_v12 }
  0x9c   : > { %v558_v19 = vpop.permute.xlu2 %557  ;;  %v548_v30 = vld [vmem:[#allocation2 + $0x10] sm:$0xff] }
  0x9d   : > { %1042 = vmatpush.xpose.msk.msrb.mxu1 %vm309_vm0, %v558_v19 }
  0xa3   : > { %v452_v10 = vpop.permute.xlu1 %451 }
  0xa4   : > { %1038 = vmatpush.xpose.msk.msra.mxu2 %vm309_vm0, %v452_v10  ;;  %v556_v22 = vpop.permute.xlu2 %555 }
  0xa5   : > { %1043 = vmatpush.xpose.msk.msrb.mxu1 %vm309_vm0, %v556_v22 }
  0xa8   : > { %1039 = vmatpush.xpose.msk.msra.mxu2 %vm309_vm0, %v450_v11 }
  0xb9   : > { %v380_v6 = vpop.f32.mrf.mxu0 }
  0xba   : > { %v385_v7 = vsel %vm384_vm2, %v380_v6, -inf }
  0xbb   : > { %386 = vmax.xlane.f32.xlu0 %v385_v7 }
  0xcf   : > { %314 = vrot.lane.b32.xlu0 %v308_v2, %s1361_s18 }
  0xd7   : > { %661 = vrot.lane.b32.xlu0 %v349_v3, %s1364_s22 }
 0x12e   : > { %v387_v14 = vpop.xlane.xlu0 %386 }
 0x12f   : > { %v388_v15 = vmax.f32 %v383_v13, %v387_v14 }
 0x131   : > { %v389_v16 = vsub.f32 %v383_v13, %v388_v15  ;;  %440 = vst.msk [vmem:[#allocation3] sm:$0xff] %vm335_vm1, %v388_v15  ;;  %394 = vperm.xlu1 %1139, %v388_v15  }
 0x133   : > { %v390_v46 = vmul.f32 1.442695, %v389_v16 }
 0x139   : > { %330 = vrot.lane.b32.xlu1 %v308_v2, %s1364_s22 }
 0x141   : > { %663 = vrot.lane.b32.xlu1 %v350_v0, %s1364_s22  ;;  %v315_v17 = vpop.permute.xlu0 %314 }
 0x142   : > { %318 = vst.msk [vmem:[#allocation2 + $0x8] sm:$0xff] %vm309_vm0, %v315_v17 }
 0x149   : > { %v442_v18 = vld [vmem:[#allocation2 + $0x8] sm:$0xff]  ;;  %v662_v31 = vpop.permute.xlu0 %661 }
 0x14a   : > { %1040 = vmatmul.msk.f32.vlgmr.msra.gmra.mxu2 %vm309_vm0, %v442_v18 }
 0x1a3   : > { %v395_v23 = vpop.permute.xlu1 %394 }
 0x1a4   : > { %v397_v24 = vsub.f32 %v380_v6, %v395_v23 }
 0x1a6   : > { %v398_v25 = vmul.f32 1.442695, %v397_v24 }
 0x1a8   : > { %1157 = vpow2.f32 %v398_v25  ;;  %v498_v25 = vld [vmem:[#allocation4 + $0x8] sm:$0xff] }
 0x1a9   : > { %1159 = vpow2.f32 %v390_v46 }
 0x1ab   : > { %v331_v26 = vpop.permute.xlu1 %330 }
 0x1ac   : > { %334 = vst.msk [vmem:[#allocation2 + $0x18] sm:$0xff] %vm309_vm0, %v331_v26 }
 0x1ae   : > { %v1158_v27 = vpop.eup %1157 }
 0x1af   : > { %1037 = vmatmul.msk.f32.vlgmr.msra.gmra.mxu1 %vm384_vm2, %v1158_v27  ;;  %v402_v35 = vsel %vm384_vm2, %v1158_v27, 0.0  ;;  %v1572_v48 = vpop.eup %1159 }
 0x1b0   : > { %v401_v50 = vmul.f32 %v1572_v48, %v400_v49 }
 0x1b3   : > { %v664_v29 = vpop.permute.xlu1 %663  ;;  %v654_v32 = vld [vmem:[#allocation2 + $0x18] sm:$0xff] }
 0x1b4   : > { %1046 = vmatpush.xpose.msk.msrb.mxu0 %vm309_vm0, %v664_v29 }
 0x1b7   : > { %1044 = vmatmul.msk.f32.vlgmr.msrb.gmra.mxu1 %vm309_vm0, %v548_v30 }
 0x1b8   : > { %1047 = vmatpush.xpose.msk.msrb.mxu0 %vm309_vm0, %v662_v31  ;;  %v710_v31 = vld [vmem:[#allocation4 + $0x18] sm:$0xff] }
 0x1bb   : > { %1048 = vmatmul.msk.f32.vlgmr.msrb.gmra.mxu0 %vm309_vm0, %v654_v32 }
 0x1cd   : > { %v477_v33 = vpop.f32.mrf.mxu2 }
 0x1ce   : > { %v482_v34 = vsel %vm384_vm2, %v477_v33, -inf }
 0x1cf   : > { %483 = vmax.xlane.f32.xlu1 %v482_v34 }
 0x1e8   : > { %1142 = vrot.lane.b32.xlu1 %v1141_v28, %s1361_s18 }
 0x1f0   : > { %1148 = vrot.lane.b32.xlu1 %v1141_v28, %s1363_s24 }
 0x21a   : > { %403 = vadd.xlane.f32.xlu1 %v402_v35 }
 0x22c   : > { %v1555_v36 = vpop.f32.mrf.mxu1 }
 0x234   : > { %v1557_v37 = vpop.f32.mrf.mxu1 }
 0x235   : > { %v588_v38 = vsel %vm384_vm2, %v1557_v37, -inf }
 0x236   : > { %589 = vmax.xlane.f32.xlu2 %v588_v38 }
 0x238   : > { %v689_v39 = vpop.f32.mrf.mxu0 }
 0x239   : > { %v694_v40 = vsel %vm384_vm2, %v689_v39, -inf }
 0x23a   : > { %695 = vmax.xlane.f32.xlu0 %v694_v40 }
 0x242   : > { %v484_v42 = vpop.xlane.xlu1 %483 }
 0x243   : > { %v1565_v43 = vmax.f32 %v1562_v41, %v484_v42 }
 0x245   : > { %v486_v44 = vsub.f32 %v1562_v41, %v1565_v43  ;;  %546 = vst.msk [vmem:[#allocation3 + $0x8] sm:$0xff] %vm335_vm1, %v1565_v43  ;;  %v537_v41 = vld [vmem:[#allocation5 + $0x8] sm:$0xff] }
 0x247   : > { %v487_v20 = vmul.f32 1.442695, %v486_v44 }
 0x24e   : > { %491 = vperm.xlu2 %1140, %v1565_v43  }
 0x25a   : > { %v1143_v45 = vpop.permute.xlu1 %1142 }
 0x25b   : > { %v1144_v53 = vunpack.i.l.bf16 %v1143_v45  ;;  %v1145_v54 = vunpack.i.h.bf16 %v1143_v45  ;;  %v431_v45 = vld [vmem:[#allocation5] sm:$0xff] }
 0x25d   : > { %530 = vmatpush.msra.mxu3 %v1144_v53 }
 0x25f   : > { %531 = vmatpush.msra.mxu3 %v1145_v54  ;;  %v749_v54 = vld [vmem:[#allocation5 + $0x18] sm:$0xff] }
 0x262   : > { %v1149_v47 = vpop.permute.xlu1 %1148 }
 0x263   : > { %v1150_v7 = vunpack.i.l.bf16 %v1149_v47  ;;  %v1151_v8 = vunpack.i.h.bf16 %v1149_v47 }
 0x265   : > { %636 = vmatpush.msrb.mxu3 %v1150_v7 }
 0x267   : > { %637 = vmatpush.msrb.mxu3 %v1151_v8 }
 0x28d   : > { %v404_v51 = vpop.xlane.xlu1 %403 }
 0x28e   : > { %v405_v52 = vadd.f32 %v404_v51, %v401_v50  ;;  %v643_v50 = vld [vmem:[#allocation5 + $0x10] sm:$0xff] }
 0x290   : > { %407 = vst.msk [vmem:[#allocation4] sm:$0xff] %vm335_vm1, %v405_v52 }
 0x297   : > { %v766_v6 = vld [vmem:[#allocation4] sm:$0xff] }
 0x2a9   : > { %v590_v56 = vpop.xlane.xlu2 %589 }
 0x2aa   : > { %v591_v57 = vmax.f32 %v587_v55, %v590_v56 }
 0x2ac   : > { %652 = vst.msk [vmem:[#allocation3 + $0x10] sm:$0xff] %vm335_vm1, %v591_v57  ;;  %597 = vperm.xlu0 %1146, %v591_v57   ;;  %v592_v3 = vsub.f32 %v587_v55, %v591_v57 }
 0x2ad   : > { %v696_v59 = vpop.xlane.xlu0 %695 }
 0x2ae   : > { %v697_v60 = vmax.f32 %v693_v58, %v696_v59  ;;  %v593_v4 = vmul.f32 1.442695, %v592_v3 }
 0x2b0   : > { %v698_v61 = vsub.f32 %v693_v58, %v697_v60  ;;  %758 = vst.msk [vmem:[#allocation3 + $0x18] sm:$0xff] %vm335_vm1, %v697_v60  ;;  %703 = vperm.xlu2 %1140, %v697_v60  }
 0x2b1   : > { %v492_v62 = vpop.permute.xlu2 %491 }
 0x2b2   : > { %v494_v63 = vsub.f32 %v477_v33, %v492_v62  ;;  %v699_v24 = vmul.f32 1.442695, %v698_v61 }
 0x2b4   : > { %v495_v0 = vmul.f32 1.442695, %v494_v63 }
 0x2b6   : > { %1161 = vpow2.f32 %v495_v0 }
 0x2b7   : > { %1163 = vpow2.f32 %v593_v4 }
 0x2b8   : > { %1153 = vrot.lane.b32.xlu2 %v1141_v28, %s1364_s22 }
 0x2bc   : > { %v1162_v1 = vpop.eup %1161 }
 0x2bd   : > { %1041 = vmatmul.msk.f32.vlgmr.msra.gmra.mxu3 %vm384_vm2, %v1162_v1  ;;  %v500_v2 = vsel %vm384_vm2, %v1162_v1, 0.0  ;;  %v1164_v5 = vpop.eup %1163 }
 0x2d6   : > { %501 = vadd.xlane.f32.xlu0 %v500_v2 }
 0x2ea   : > { %646 = vperm.xlu0 %1146, %v1164_v5  }
 0x2f2   : > { %772 = vperm.xlu0 %1146, %v766_v6  }
 0x30a   : > { %v704_v9 = vpop.permute.xlu2 %703 }
 0x30b   : > { %v706_v10 = vsub.f32 %v689_v39, %v704_v9 }
 0x30d   : > { %v707_v11 = vmul.f32 1.442695, %v706_v10 }
 0x30f   : > { %1165 = vpow2.f32 %v707_v11 }
 0x312   : > { %v1154_v12 = vpop.permute.xlu2 %1153 }
 0x313   : > { %v1155_v13 = vunpack.i.l.bf16 %v1154_v12  ;;  %v1156_v14 = vunpack.i.h.bf16 %v1154_v12 }
 0x315   : > { %v1166_v15 = vpop.eup %1165  ;;  %742 = vmatpush.msrb.mxu2 %v1155_v13 }
 0x316   : > { %v712_v16 = vsel %vm384_vm2, %v1166_v15, 0.0 }
 0x317   : > { %713 = vadd.xlane.f32.xlu1 %v712_v16  ;;  %743 = vmatpush.msrb.mxu2 %v1156_v14 }
 0x318   : > { %1049 = vmatmul.msk.f32.vlgmr.msrb.gmra.mxu2 %vm384_vm2, %v1166_v15 }
 0x31e   : > { %v598_v17 = vpop.permute.xlu0 %597 }
 0x31f   : > { %v600_v18 = vsub.f32 %v1557_v37, %v598_v17  ;;  %v604_v37 = vld [vmem:[#allocation4 + $0x10] sm:$0xff] }
 0x320   : > { %v605_v38 = vmul.f32 %v1164_v5, %v604_v37 }
 0x321   : > { %v601_v19 = vmul.f32 1.442695, %v600_v18 }
 0x323   : > { %1167 = vpow2.f32 %v601_v19 }
 0x324   : > { %1169 = vpow2.f32 %v487_v20 }
 0x325   : > { %1171 = vpow2.f32 %v699_v24 }
 0x329   : > { %v1168_v21 = vpop.eup %1167 }
 0x32a   : > { %1045 = vmatmul.msk.f32.vlgmr.msrb.gmra.mxu3 %vm384_vm2, %v1168_v21  ;;  %v606_v22 = vsel %vm384_vm2, %v1168_v21, 0.0  ;;  %v1170_v23 = vpop.eup %1169 }
 0x32b   : > { %607 = vadd.xlane.f32.xlu2 %v606_v22  ;;  %v499_v26 = vmul.f32 %v1170_v23, %v498_v25  ;;  %v1172_v28 = vpop.eup %1171 }
 0x32c   : > { %v711_v32 = vmul.f32 %v1172_v28, %v710_v31 }
 0x330   : > { %540 = vperm.xlu1 %1139, %v1170_v23  }
 0x340   : > { %v533_v44 = vpop.f32.mrf.mxu3 }
 0x343   : > { %434 = vperm.xlu2 %1140, %v1572_v48  }
 0x349   : > { %v502_v27 = vpop.xlane.xlu0 %501 }
 0x34a   : > { %v503_v29 = vadd.f32 %v502_v27, %v499_v26 }
 0x34b   : > { %752 = vperm.xlu2 %1140, %v1172_v28  }
 0x34c   : > { %504 = vst.msk [vmem:[#allocation4 + $0x8] sm:$0xff] %vm335_vm1, %v503_v29 }
 0x353   : > { %v767_v30 = vld [vmem:[#allocation4 + $0x8] sm:$0xff] }
 0x354   : > { %777 = vperm.xlu1 %1139, %v767_v30  }
 0x35c   : > { %v647_v51 = vpop.permute.xlu0 %646 }
 0x35d   : > { %v649_v53 = vmul.f32 %v647_v51, %v643_v50 }
 0x364   : > { %v773_v9 = vpop.permute.xlu0 %772 }
 0x38a   : > { %v714_v33 = vpop.xlane.xlu1 %713 }
 0x38b   : > { %v715_v34 = vadd.f32 %v714_v33, %v711_v32 }
 0x38d   : > { %716 = vst.msk [vmem:[#allocation4 + $0x18] sm:$0xff] %vm335_vm1, %v715_v34 }
 0x394   : > { %v769_v35 = vld [vmem:[#allocation4 + $0x18] sm:$0xff] }
 0x395   : > { %787 = vperm.xlu0 %1146, %v769_v35  }
 0x39b   : > { %v745_v59 = vpop.f32.mrf.mxu2 }
 0x39e   : > { %v608_v39 = vpop.xlane.xlu2 %607 }
 0x39f   : > { %v609_v40 = vadd.f32 %v608_v39, %v605_v38 }
 0x3a1   : > { %610 = vst.msk [vmem:[#allocation4 + $0x10] sm:$0xff] %vm335_vm1, %v609_v40  ;;  %vm795_vm1 = vweird.f32 %v773_v9 }
 0x3a2   : > { %v541_v42 = vpop.permute.xlu1 %540 }
 0x3a3   : > { %v543_v43 = vmul.f32 %v541_v42, %v537_v41  ;;  %v801_v42 = vand.u32 2147483648, %v773_v9 }
 0x3a5   : > { %v544_v46 = vadd.f32 %v543_v43, %v533_v44  ;;  %v799_v43 = vand.u32 2147483647, %v773_v9 }
 0x3a6   : > { %v435_v47 = vpop.permute.xlu2 %434 }
 0x3a7   : > { %545 = vst.msk [vmem:[#allocation5 + $0x8] sm:$0xff] %vm309_vm0, %v544_v46  ;;  %v437_v48 = vmul.f32 %v435_v47, %v431_v45  ;;  %v802_v45 = vor.u32 1.1754944e-38, %v801_v42 }
 0x3a8   : > { %v768_v49 = vld [vmem:[#allocation4 + $0x10] sm:$0xff] }
 0x3a9   : > { %v438_v52 = vadd.f32 %v437_v48, %v1555_v36  ;;  %782 = vperm.xlu2 %1140, %v768_v49  }
 0x3ab   : > { %439 = vst.msk [vmem:[#allocation5] sm:$0xff] %vm309_vm0, %v438_v52 }
 0x3ad   : > { %v639_v55 = vpop.f32.mrf.mxu3 }
 0x3ae   : > { %v650_v56 = vadd.f32 %v649_v53, %v639_v55  ;;  %v753_v57 = vpop.permute.xlu2 %752  ;;  %v763_v6 = vld [vmem:[#allocation5 + $0x8] sm:$0xff] }
 0x3af   : > { %v755_v58 = vmul.f32 %v753_v57, %v749_v54 }
 0x3b0   : > { %651 = vst.msk [vmem:[#allocation5 + $0x10] sm:$0xff] %vm309_vm0, %v650_v56 }
 0x3b1   : > { %v756_v60 = vadd.f32 %v755_v58, %v745_v59 }
 0x3b2   : > { %v762_v46 = vld [vmem:[#allocation5] sm:$0xff] }
 0x3b3   : > { %757 = vst.msk [vmem:[#allocation5 + $0x18] sm:$0xff] %vm309_vm0, %v756_v60 }
 0x3b7   : > { %v764_v27 = vld [vmem:[#allocation5 + $0x10] sm:$0xff] }
 0x3ba   : > { %v765_v33 = vld [vmem:[#allocation5 + $0x18] sm:$0xff] }
 0x3c6   : > { %v778_v61 = vpop.permute.xlu1 %777 }
 0x3c7   : > { %1173 = vrcp.f32 %v778_v61  ;;  %v816_v0 = vand.u32 2147483648, %v778_v61  ;;  %v814_v2 = vand.u32 2147483647, %v778_v61  ;;  %vm810_vm4 = vweird.f32 %v778_v61 }
 0x3c9   : > { %v817_v4 = vor.u32 1.1754944e-38, %v816_v0  ;;  %vm815_vm6 = vcmp.eq.f32.partialorder %v814_v2, 8.507059e+37 }
 0x3cd   : > { %v1174_v62 = vpop.eup %1173 }
 0x3ce   : > { %v806_v63 = vmul.f32 %v1174_v62, %v778_v61  ;;  %vm811_vm3 = vweird.f32 %v1174_v62 }
 0x3cf   : > { %vm812_vm5 = vmor %vm810_vm4, %vm811_vm3  ;;  %vm800_vm4 = vcmp.eq.f32.partialorder %v799_v43, 8.507059e+37 }
 0x3d0   : > { %v807_v36 = vsub.f32 1.0, %v806_v63 }
 0x3d2   : > { %v808_v1 = vmul.f32 %v1174_v62, %v807_v36 }
 0x3d4   : > { %v809_v3 = vadd.f32 %v1174_v62, %v808_v1 }
 0x3d6   : > { %v813_v5 = vsel %vm812_vm5, %v1174_v62, %v809_v3  ;;  %vm864_vm5 = vcmask 195584  }
 0x3d7   : > { %v818_v7 = vsel %vm815_vm6, %v817_v4, %v813_v5  ;;  %vm866_vm6 = vcmask 261120  }
 0x3d8   : > { %v819_v8 = vmul.f32 %v818_v7, %v763_v6 }
 0x3da   : > { %851 = vrot.lane.b32.xlu1 %v819_v8, %s1367_s7 }
 0x403   : > { %v783_v10 = vpop.permute.xlu2 %782 }
 0x404   : > { %1175 = vrcp.f32 %v783_v10  ;;  %v831_v16 = vand.u32 2147483648, %v783_v10  ;;  %v829_v17 = vand.u32 2147483647, %v783_v10  ;;  %vm825_vm8 = vweird.f32 %v783_v10 }
 0x406   : > { %v832_v22 = vor.u32 1.1754944e-38, %v831_v16  ;;  %vm830_vm10 = vcmp.eq.f32.partialorder %v829_v17, 8.507059e+37 }
 0x407   : > { %v788_v11 = vpop.permute.xlu0 %787 }
 0x408   : > { %1177 = vrcp.f32 %v788_v11  ;;  %v846_v23 = vand.u32 2147483648, %v788_v11  ;;  %v844_v26 = vand.u32 2147483647, %v788_v11  ;;  %vm840_vm12 = vweird.f32 %v788_v11 }
 0x409   : > { %1179 = vrcp.f32 %v773_v9 }
 0x40a   : > { %v1176_v12 = vpop.eup %1175  ;;  %v847_v31 = vor.u32 1.1754944e-38, %v846_v23  ;;  %vm845_vm14 = vcmp.eq.f32.partialorder %v844_v26, 8.507059e+37 }
 0x40b   : > { %v821_v13 = vmul.f32 %v1176_v12, %v783_v10  ;;  %vm826_vm7 = vweird.f32 %v1176_v12 }
 0x40c   : > { %vm827_vm9 = vmor %vm825_vm8, %vm826_vm7 }
 0x40d   : > { %v822_v14 = vsub.f32 1.0, %v821_v13 }
 0x40e   : > { %v1178_v15 = vpop.eup %1177 }
 0x40f   : > { %v823_v18 = vmul.f32 %v1176_v12, %v822_v14  ;;  %v836_v19 = vmul.f32 %v1178_v15, %v788_v11  ;;  %vm841_vm11 = vweird.f32 %v1178_v15  ;;  %v1180_v37 = vpop.eup %1179 }
 0x410   : > { %vm842_vm13 = vmor %vm840_vm12, %vm841_vm11  ;;  %v791_v38 = vmul.f32 %v1180_v37, %v773_v9  ;;  %vm796_vm15 = vweird.f32 %v1180_v37 }
 0x411   : > { %v837_v20 = vsub.f32 1.0, %v836_v19  ;;  %v824_v21 = vadd.f32 %v1176_v12, %v823_v18  ;;  %vm797_vm3 = vmor %vm795_vm1, %vm796_vm15 }
 0x412   : > { %v792_v39 = vsub.f32 1.0, %v791_v38 }
 0x413   : > { %v838_v24 = vmul.f32 %v1178_v15, %v837_v20  ;;  %v828_v25 = vsel %vm827_vm9, %v1176_v12, %v824_v21 }
 0x414   : > { %v833_v28 = vsel %vm830_vm10, %v832_v22, %v828_v25  ;;  %v793_v40 = vmul.f32 %v1180_v37, %v792_v39 }
 0x415   : > { %v834_v29 = vmul.f32 %v833_v28, %v764_v27  ;;  %v839_v30 = vadd.f32 %v1178_v15, %v838_v24 }
 0x416   : > { %v794_v41 = vadd.f32 %v1180_v37, %v793_v40 }
 0x417   : > { %855 = vrot.lane.b32.xlu2 %v834_v29, %s1368_s8  ;;  %v843_v32 = vsel %vm842_vm13, %v1178_v15, %v839_v30 }
 0x418   : > { %v848_v34 = vsel %vm845_vm14, %v847_v31, %v843_v32  ;;  %v798_v44 = vsel %vm797_vm3, %v1180_v37, %v794_v41 }
 0x419   : > { %v849_v35 = vmul.f32 %v848_v34, %v765_v33  ;;  %v803_v48 = vsel %vm800_vm4, %v802_v45, %v798_v44 }
 0x41a   : > { %v804_v49 = vmul.f32 %v803_v48, %v762_v46 }
 0x41b   : > { %859 = vrot.lane.b32.xlu0 %v849_v35, %s1369_s29 }
 0x44c   : > { %v852_v47 = vpop.permute.xlu1 %851 }
 0x44d   : > { %v862_v51 = vsel %vm309_vm0, %v804_v49, %v852_v47 }
 0x471   : > { %v856_v50 = vpop.permute.xlu2 %855 }
 0x472   : > { %v863_v52 = vsel %vm384_vm2, %v862_v51, %v856_v50 }
 0x48d   : > { %v860_v53 = vpop.permute.xlu0 %859 }
 0x48e   : > { %v865_v54 = vsel %vm864_vm5, %v863_v52, %v860_v53 }
 0x48f   : > { %867 = vst.msk [vmem:[%s300_s5] sm:$0xff] %vm866_vm6, %v865_v54 }
 0x490   : > { %1298 = shalt.err (!%p1295_p13)
}
 0x491   : > { %1062 = dma.vmem_to_hbm [thread:$0]  (%p1445_p9), %s883_s26, 128, %s885_s14, %s869_s15  }
 0x492 PF: > { %s896_s30 = sand.u32 1, %s1337_s12   ;;  %p1075_p0 = pnand %p1020_p12, %p1452_p11 }
 0x493   : > { %s897_s24 = scalar_lea.sflag [#allocation8], %s896_s30 }
 0x494   : > { %p1076_p1 = pneg %p1075_p0 }
 0x496   : > { %1332 = dma.done.wait (%p1076_p1), %s897_s24, 128  }
 0x497   : > { %1334 = vsyncadd (%p1076_p1), %s897_s24, 4294967168  ;;  %s22_s17 = sadd.s32 1, %s1357_s17   ;;  %s1656_s22 = sld [smem:[#allocation16_spill]] }
 0x498   : > { %p19_p2 = scmp.ge.s32.totalorder %s22_s17, 4   ;;  %s1657_s14 = sld [smem:[#allocation18_spill]] }
 0x499   : > { %s1658_s25 = sld [smem:[#allocation17_spill]]  ;;  %s1659_s12 = smov %s1341_s13 }
 0x49a   : > { %s1661_s15 = smov %s1353_s16 }
 0x49b   :  { %21 = sbr.rel (!%p19_p2) target bundleno = 10 (0xa), region = 124 }
 0x49d   : > { %s1660_s13 = smov %s1656_s22 }
 0x49f   : > { %s1662_s16 = smov %s1658_s25 }
 0x4a0   :  { %903 = vsyncpa [#allocation7], 1 }
 0x4a1   :  { %905 = vsyncpa [#allocation7 + $0x1], 1 }
 0x4a2   :  { %906 = vsyncpa [#allocation10], 1 }
 0x4a3   :  { %908 = vsyncpa [#allocation10 + $0x1], 1 }
 0x4a4   :  { %909 = vsyncpa [#allocation8], 1 }
 0x4a5   :  { %911 = vsyncpa [#allocation8 + $0x1], 1 }

</bundles_post_ra>
